<compile_context>
chip_gen: v7x
topology: tpu7x:2x2x1
jax: 0.10.0
libtpu: 0.0.40
codegen_flags: <defaults>
</compile_context>

<pallas_src>
import jax
import jax.numpy as jnp
from jax.experimental import pallas as pl
from jax.experimental.pallas import tpu as pltpu

# Large negative bias for padded output lanes: exp(x - max) underflows to 0.
_NEG_INF = -1e30


def _make_cat_encoder_kernel(num_layers):
    """Kernel closure: full FF stack (MXU bf16 -> f32 acc) + ReLU + softmax."""
    n_params = 2 * (num_layers + 1)

    def kernel(*refs):
        # refs = (y_ref, w0, b0, ..., w_{L-1}, b_{L-1}, w_out, b_out, o_ref)
        y_ref = refs[0]
        param_refs = refs[1 : 1 + n_params]
        o_ref = refs[1 + n_params]

        x = y_ref[...]  # bf16 activations feed the MXU

        # Hidden layers: bf16 matmul (MXU, f32 accumulate) + f32 bias/ReLU (VPU).
        for i in range(num_layers):
            w = param_refs[2 * i][...]               # bf16 [fan_in, fan_out]
            b = param_refs[2 * i + 1][...]           # f32  [1, fan_out]
            h = jnp.dot(x, w, preferred_element_type=jnp.float32) + b
            h = jnp.maximum(h, 0.0)
            x = h.astype(jnp.bfloat16)

        # Output projection into the lane-padded logit slab.
        w_out = param_refs[2 * num_layers][...]      # bf16 [hid, out_pad]
        b_out = param_refs[2 * num_layers + 1][...]  # f32  [1, out_pad]; pads = -1e30
        z = jnp.dot(x, w_out, preferred_element_type=jnp.float32) + b_out

        # Numerically-stable softmax over the (padded) feature axis. Padded
        # lanes carry logits ~-1e30, so exp(...) == 0 there and the real
        # columns' normalization is exact.
        z = z - jnp.max(z, axis=-1, keepdims=True)
        e = jnp.exp(z)
        denom = jnp.sum(e, axis=-1, keepdims=True)
        o_ref[...] = (e * pl.reciprocal(denom, approx=True)).astype(o_ref.dtype)

    return kernel


def cat_encoder_forward(Y, params, num_layers, *, max_tile_rows=1024):
    """Y: [B, dim_input] f32. params: flat list [W0, b0, ..., W_out, b_out] (f32).

    Returns softmax(FF(Y), axis=1) as [B, dim_output] f32.
    """
    B, dim_input = Y.shape
    dim_hidden = params[0].shape[-1] if num_layers > 0 else dim_input
    dim_output = params[-1].shape[-1]

    # ---- Lane-dense output padding (multiple of 128). ----
    out_pad = pl.cdiv(dim_output, 128) * 128

    # ---- Batch tiling: TB is a multiple of 8 (sublane rule), capped so the
    # double-buffered (TB x dim_input) bf16 input tiles and (TB x out_pad) f32
    # output tiles stay well under the scoped VMEM limit on every generation.
    TB = min(max_tile_rows, pl.cdiv(B, 8) * 8)
    B_pad = pl.cdiv(B, TB) * TB
    grid = (B_pad // TB,)

    # ---- Cast / pad operands in the wrapper (outside the kernel). ----
    y_bf16 = Y.astype(jnp.bfloat16)
    if B_pad != B:
        y_bf16 = jnp.zeros((B_pad, dim_input), jnp.bfloat16).at[:B].set(y_bf16)

    kernel_params = []
    for i in range(num_layers):
        kernel_params.append(params[2 * i].astype(jnp.bfloat16))     # W_i  bf16
        kernel_params.append(params[2 * i + 1].astype(jnp.float32))  # b_i  f32
    w_out = params[2 * num_layers].astype(jnp.bfloat16)
    b_out = params[2 * num_layers + 1].astype(jnp.float32)
    # Zero-pad W_out columns; padded bias lanes get a huge negative logit.
    w_out_p = jnp.zeros((w_out.shape[0], out_pad), jnp.bfloat16)
    w_out_p = w_out_p.at[:, :dim_output].set(w_out)
    b_out_p = jnp.full((1, out_pad), _NEG_INF, jnp.float32)
    b_out_p = b_out_p.at[:, :dim_output].set(b_out)
    kernel_params.append(w_out_p)
    kernel_params.append(b_out_p)

    # ---- BlockSpecs: Y/out tiled over the batch grid; params VMEM-resident. ----
    in_specs = [pl.BlockSpec((TB, dim_input), lambda i: (i, 0))]
    for p in kernel_params:
        in_specs.append(pl.BlockSpec(p.shape, lambda i: (0, 0)))
    out_spec = pl.BlockSpec((TB, out_pad), lambda i: (i, 0))

    # ---- Cost estimate (accurate picture for XLA's scheduler). ----
    layer_dims = [dim_input] + [dim_hidden] * num_layers + [out_pad]
    flops = 2 * B_pad * sum(layer_dims[i] * layer_dims[i + 1]
                            for i in range(len(layer_dims) - 1))
    transcendentals = B_pad * out_pad + B_pad  # exp + reciprocal
    bytes_accessed = (y_bf16.size * y_bf16.dtype.itemsize
                      + sum(p.size * p.dtype.itemsize for p in kernel_params)
                      + B_pad * out_pad * 4)

    kernel = _make_cat_encoder_kernel(num_layers)

    out_padded = pl.pallas_call(
        kernel,
        grid=grid,
        in_specs=in_specs,
        out_specs=out_spec,
        out_shape=jax.ShapeDtypeStruct((B_pad, out_pad), jnp.float32),
        compiler_params=pltpu.CompilerParams(
            dimension_semantics=("parallel",)),
        cost_estimate=pl.CostEstimate(
            flops=flops,
            transcendentals=transcendentals,
            bytes_accessed=bytes_accessed),
    )(y_bf16, *kernel_params)

    # Slice padded batch rows / padded output lanes back off.
    return out_padded[:B, :dim_output]


def init_params(key, dim_input, dim_hidden, dim_output, num_layers):
    """Deterministic synthetic parameters. Weights: [fan_in, fan_out]; bias: [1, fan_out]."""
    params = []
    fan_in = dim_input
    for _ in range(num_layers):
        key, kw, kb = jax.random.split(key, 3)
        scale = 1.0 / jnp.sqrt(fan_in)
        params.append(jax.random.uniform(kw, (fan_in, dim_hidden), jnp.float32, -scale, scale))
        params.append(jax.random.uniform(kb, (1, dim_hidden), jnp.float32, -scale, scale))
        fan_in = dim_hidden
    key, kw, kb = jax.random.split(key, 3)
    scale = 1.0 / jnp.sqrt(fan_in)
    params.append(jax.random.uniform(kw, (fan_in, dim_output), jnp.float32, -scale, scale))
    params.append(jax.random.uniform(kb, (1, dim_output), jnp.float32, -scale, scale))
    return params


def reference_forward(Y, params, num_layers, *, match_bf16=False):
    """Pure-JAX reference. With match_bf16=True, mimics the kernel's bf16 MXU inputs."""
    def maybe(x):
        return x.astype(jnp.bfloat16).astype(jnp.float32) if match_bf16 else x
    x = maybe(Y)
    for i in range(num_layers):
        x = jnp.maximum(jnp.dot(x, maybe(params[2 * i])) + params[2 * i + 1], 0.0)
        x = maybe(x)
    z = jnp.dot(x, maybe(params[2 * num_layers])) + params[2 * num_layers + 1]
    return jax.nn.softmax(z, axis=1)


if __name__ == "__main__":
    # Small shapes consistent with the module's forward.
    B, dim_input, dim_hidden, dim_output, num_layers = 8, 32, 32, 16, 2

    key = jax.random.PRNGKey(0)
    key, ky = jax.random.split(key)
    Y = jax.random.normal(ky, (B, dim_input), jnp.float32)
    params = init_params(key, dim_input, dim_hidden, dim_output, num_layers)

    out = cat_encoder_forward(Y, params, num_layers)
    out = jax.block_until_ready(out)
    assert out.shape == (B, dim_output)

    # Compare against a bf16-matched reference (kernel feeds bf16 to the MXU and
    # uses the approximate EUP reciprocal, so 1e-5 is not the right bar).
    ref_bf16 = reference_forward(Y, params, num_layers, match_bf16=True)
    assert jnp.allclose(out, ref_bf16, atol=5e-3, rtol=5e-3), "mismatch vs bf16-matched reference"

    # Sanity vs. the pure-f32 semantics of the PyTorch module (looser tolerance).
    ref_f32 = reference_forward(Y, params, num_layers, match_bf16=False)
    assert jnp.allclose(out, ref_f32, atol=2e-2, rtol=2e-2), "mismatch vs f32 reference"

    # Rows of a softmax sum to ~1 (approx reciprocal => relaxed tolerance).
    assert jnp.allclose(jnp.sum(out, axis=1), jnp.ones((B,)), atol=5e-3)

    print("KERNEL_OK")
</pallas_src>

<mosaic_0001>
module attributes {stable_mosaic.version = 11 : i64} {
  func.func @kernel(%arg0: i32, %arg1: memref<8x32xbf16, #tpu.memory_space<vmem>>, %arg2: memref<32x32xbf16, #tpu.memory_space<vmem>>, %arg3: memref<1x32xf32, #tpu.memory_space<vmem>>, %arg4: memref<32x32xbf16, #tpu.memory_space<vmem>>, %arg5: memref<1x32xf32, #tpu.memory_space<vmem>>, %arg6: memref<32x128xbf16, #tpu.memory_space<vmem>>, %arg7: memref<1x128xf32, #tpu.memory_space<vmem>>, %arg8: memref<8x128xf32, #tpu.memory_space<vmem>>) attributes {dimension_semantics = [#tpu.dimension_semantics<parallel>], iteration_bounds = array<i64: 1>, scalar_prefetch = 0 : i64, scratch_operands = 0 : i64, tpu.core_type = #tpu.core_type<tc>, window_params = [{transform_indices = @transform_0, window_bounds = array<i64: 8, 32>}, {pipeline_mode = #tpu.pipeline_mode<synchronous>, transform_indices = @transform_1, window_bounds = array<i64: 32, 32>}, {pipeline_mode = #tpu.pipeline_mode<synchronous>, transform_indices = @transform_2, window_bounds = array<i64: 1, 32>}, {pipeline_mode = #tpu.pipeline_mode<synchronous>, transform_indices = @transform_3, window_bounds = array<i64: 32, 32>}, {pipeline_mode = #tpu.pipeline_mode<synchronous>, transform_indices = @transform_4, window_bounds = array<i64: 1, 32>}, {pipeline_mode = #tpu.pipeline_mode<synchronous>, transform_indices = @transform_5, window_bounds = array<i64: 32, 128>}, {pipeline_mode = #tpu.pipeline_mode<synchronous>, transform_indices = @transform_6, window_bounds = array<i64: 1, 128>}, {transform_indices = @transform_7, window_bounds = array<i64: 8, 128>}]} {
    %c0 = arith.constant 0 : index
    %c0_0 = arith.constant 0 : index
    %0 = vector.load %arg1[%c0, %c0_0] : memref<8x32xbf16, #tpu.memory_space<vmem>>, vector<8x32xbf16>
    %c0_1 = arith.constant 0 : index
    %c0_2 = arith.constant 0 : index
    %1 = vector.load %arg2[%c0_1, %c0_2] : memref<32x32xbf16, #tpu.memory_space<vmem>>, vector<32x32xbf16>
    %c0_3 = arith.constant 0 : index
    %c0_4 = arith.constant 0 : index
    %2 = vector.load %arg3[%c0_3, %c0_4] : memref<1x32xf32, #tpu.memory_space<vmem>>, vector<1x32xf32>
    %cst = arith.constant dense<0.000000e+00> : vector<8x32xf32>
    %3 = tpu.matmul %0, %1, %cst {dimension_numbers = #tpu.dot_dimension_numbers<[1], [0], [0], [1], [0, 0, 1, 1], [], []>} : vector<8x32xbf16>, vector<32x32xbf16>, vector<8x32xf32> -> vector<8x32xf32>
    %4 = vector.broadcast %2 : vector<1x32xf32> to vector<8x32xf32>
    %5 = arith.addf %3, %4 : vector<8x32xf32>
    %cst_5 = arith.constant 0.000000e+00 : f32
    %6 = vector.broadcast %cst_5 : f32 to vector<8x32xf32>
    %7 = arith.maximumf %5, %6 : vector<8x32xf32>
    %8 = arith.truncf %7 : vector<8x32xf32> to vector<8x32xbf16>
    %c0_6 = arith.constant 0 : index
    %c0_7 = arith.constant 0 : index
    %9 = vector.load %arg4[%c0_6, %c0_7] : memref<32x32xbf16, #tpu.memory_space<vmem>>, vector<32x32xbf16>
    %c0_8 = arith.constant 0 : index
    %c0_9 = arith.constant 0 : index
    %10 = vector.load %arg5[%c0_8, %c0_9] : memref<1x32xf32, #tpu.memory_space<vmem>>, vector<1x32xf32>
    %cst_10 = arith.constant dense<0.000000e+00> : vector<8x32xf32>
    %11 = tpu.matmul %8, %9, %cst_10 {dimension_numbers = #tpu.dot_dimension_numbers<[1], [0], [0], [1], [0, 0, 1, 1], [], []>} : vector<8x32xbf16>, vector<32x32xbf16>, vector<8x32xf32> -> vector<8x32xf32>
    %12 = vector.broadcast %10 : vector<1x32xf32> to vector<8x32xf32>
    %13 = arith.addf %11, %12 : vector<8x32xf32>
    %cst_11 = arith.constant 0.000000e+00 : f32
    %14 = vector.broadcast %cst_11 : f32 to vector<8x32xf32>
    %15 = arith.maximumf %13, %14 : vector<8x32xf32>
    %16 = arith.truncf %15 : vector<8x32xf32> to vector<8x32xbf16>
    %c0_12 = arith.constant 0 : index
    %c0_13 = arith.constant 0 : index
    %17 = vector.load %arg6[%c0_12, %c0_13] : memref<32x128xbf16, #tpu.memory_space<vmem>>, vector<32x128xbf16>
    %c0_14 = arith.constant 0 : index
    %c0_15 = arith.constant 0 : index
    %18 = vector.load %arg7[%c0_14, %c0_15] : memref<1x128xf32, #tpu.memory_space<vmem>>, vector<1x128xf32>
    %cst_16 = arith.constant dense<0.000000e+00> : vector<8x128xf32>
    %19 = tpu.matmul %16, %17, %cst_16 {dimension_numbers = #tpu.dot_dimension_numbers<[1], [0], [0], [1], [0, 0, 1, 1], [], []>} : vector<8x32xbf16>, vector<32x128xbf16>, vector<8x128xf32> -> vector<8x128xf32>
    %20 = vector.broadcast %18 : vector<1x128xf32> to vector<8x128xf32>
    %21 = arith.addf %19, %20 : vector<8x128xf32>
    %cst_17 = arith.constant dense<0xFF800000> : vector<8xf32>
    %22 = vector.multi_reduction <maximumf>, %21, %cst_17 [1] : vector<8x128xf32> to vector<8xf32>
    %23 = vector.shape_cast %22 : vector<8xf32> to vector<8x1xf32>
    %24 = vector.broadcast %23 : vector<8x1xf32> to vector<8x128xf32>
    %25 = arith.subf %21, %24 : vector<8x128xf32>
    %26 = math.exp %25 : vector<8x128xf32>
    %cst_18 = arith.constant dense<0.000000e+00> : vector<8xf32>
    %27 = vector.multi_reduction <add>, %26, %cst_18 [1] : vector<8x128xf32> to vector<8xf32>
    %28 = vector.shape_cast %27 : vector<8xf32> to vector<8x1xf32>
    %29 = tpu.reciprocal %28 {approx = true} : vector<8x1xf32> -> vector<8x1xf32>
    %30 = vector.broadcast %29 : vector<8x1xf32> to vector<8x128xf32>
    %31 = arith.mulf %26, %30 : vector<8x128xf32>
    %c0_19 = arith.constant 0 : index
    %c0_20 = arith.constant 0 : index
    %32 = vector.load %arg8[%c0_19, %c0_20] : memref<8x128xf32, #tpu.memory_space<vmem>>, vector<8x128xf32>
    tpu.vector_store %arg8[%c0_19, %c0_20], %31 {strides = array<i32>} : memref<8x128xf32, #tpu.memory_space<vmem>>, vector<8x128xf32>,
    return
  }
  func.func @transform_0(%arg0: i32) -> (i32, i32) {
    %c0_i32 = arith.constant 0 : i32
    %c0_i32_0 = arith.constant 0 : i32
    return %arg0, %c0_i32 : i32, i32
  }
  func.func @transform_1(%arg0: i32) -> (i32, i32) {
    %c0_i32 = arith.constant 0 : i32
    %c0_i32_0 = arith.constant 0 : i32
    %c0_i32_1 = arith.constant 0 : i32
    return %c0_i32, %c0_i32_0 : i32, i32
  }
  func.func @transform_2(%arg0: i32) -> (i32, i32) {
    %c0_i32 = arith.constant 0 : i32
    %c0_i32_0 = arith.constant 0 : i32
    %c0_i32_1 = arith.constant 0 : i32
    return %c0_i32, %c0_i32_0 : i32, i32
  }
  func.func @transform_3(%arg0: i32) -> (i32, i32) {
    %c0_i32 = arith.constant 0 : i32
    %c0_i32_0 = arith.constant 0 : i32
    %c0_i32_1 = arith.constant 0 : i32
    return %c0_i32, %c0_i32_0 : i32, i32
  }
  func.func @transform_4(%arg0: i32) -> (i32, i32) {
    %c0_i32 = arith.constant 0 : i32
    %c0_i32_0 = arith.constant 0 : i32
    %c0_i32_1 = arith.constant 0 : i32
    return %c0_i32, %c0_i32_0 : i32, i32
  }
  func.func @transform_5(%arg0: i32) -> (i32, i32) {
    %c0_i32 = arith.constant 0 : i32
    %c0_i32_0 = arith.constant 0 : i32
    %c0_i32_1 = arith.constant 0 : i32
    return %c0_i32, %c0_i32_0 : i32, i32
  }
  func.func @transform_6(%arg0: i32) -> (i32, i32) {
    %c0_i32 = arith.constant 0 : i32
    %c0_i32_0 = arith.constant 0 : i32
    %c0_i32_1 = arith.constant 0 : i32
    return %c0_i32, %c0_i32_0 : i32, i32
  }
  func.func @transform_7(%arg0: i32) -> (i32, i32) {
    %c0_i32 = arith.constant 0 : i32
    %c0_i32_0 = arith.constant 0 : i32
    return %arg0, %c0_i32 : i32, i32
  }
}

</mosaic_0001>

<bundles_post_ra>
// kernel: tpu_custom_call.1
= control target key start
LH: loop header
LB: loop body
LE: loop exit
PB: predicated region body
PF: predicated region fallthrough
CT: control target
= control target key end

     0   :  { %12 = vsyncpa [#allocation3], 0  ;;  %s574_s0 = inlined_call_operand.hbm [shape: bf16[8,32], index: 0, kind: input, shape index: {}]   ;;  %s575_s1 = inlined_call_operand.hbm [shape: bf16[32,32], index: 1, kind: input, shape index: {}]   ;;  %s576_s2 = inlined_call_operand.vmem [shape: f32[1,32], index: 2, kind: input, shape index: {}]   ;;  %s577_s3 = inlined_call_operand.hbm [shape: bf16[32,32], index: 3, kind: input, shape index: {}]   ;;  %s578_s4 = inlined_call_operand.vmem [shape: f32[1,32], index: 4, kind: input, shape index: {}]   ;;  %s579_s5 = inlined_call_operand.vmem [shape: bf16[32,128], index: 5, kind: input, shape index: {}]   ;;  %s580_s6 = inlined_call_operand.vmem [shape: f32[1,128], index: 6, kind: input, shape index: {}]   ;;  %s581_s7 = inlined_call_operand.hbm [shape: f32[8,128], index: 7, kind: output, shape index: {}]  }
   0x1   :  { %13 = vsyncpa [#allocation6], 0 }
   0x2   :  { %14 = vsyncpa [#allocation4], 0  ;;  %s454_s24 = smov [#allocation5]   ;;  %s360_s28 = scalar_lea.hbm %s575_s1, 256 }
   0x3   :  { %s30_s25 = sshll.u32 %s454_s24, 4  ;;  %p361_p0 = scmp.ne.s32.totalorder %s575_s1, %s360_s28  ;;  %s31_s25 = int_to_ptr.vmem [resolvable:$true] %s30_s25 }
   0x4   :  { %p364_p1 = scmp.lt.u32.totalorder %s360_s28, %s575_s1 }
   0x6   :  { %p366_p2 = pnand %p364_p1, %p361_p0 }
   0x8   :  { %369 = shalt.err (!%p366_p2)
}
   0x9   :  { %s370_s10 = scalar_lea.vmem %s31_s25, 256  ;;  %p375_p4 = scmp.lt.s32.totalorder %s31_s25, %s31_s25 }
   0xa   :  { %p371_p3 = scmp.ne.s32.totalorder %s31_s25, %s370_s10  ;;  %p376_p5 = scmp.lt.s32.totalorder %s370_s10, %s370_s10 }
   0xc   :  { %p377_p6 = por %p376_p5, %p375_p4 }
   0xe   :  { %p378_p7 = pnand %p377_p6, %p371_p3 }
  0x10   :  { %381 = shalt.err (!%p378_p7)
}
  0x11   :  { %s455_s11 = smov 64   ;;  %s456_s12 = smov 4  }
  0x12   :  { %36 = dma.hbm_to_vmem [thread:$0]  %s575_s1, 256, %s31_s25, [#allocation6], %s455_s11, %s455_s11, %s456_s12  }
  0x13   :  { %s457_s15 = smov [#allocation2]   ;;  %s458_s17 = smov [#allocation7]  }
  0x14   :  { %s21_s16 = sshll.u32 %s457_s15, 4  ;;  %s44_s18 = sshll.u32 %s458_s17, 4  ;;  %s22_s16 = int_to_ptr.vmem [resolvable:$true] %s21_s16  ;;  %s45_s18 = int_to_ptr.vmem [resolvable:$true] %s44_s18 }
  0x15   :  { %s382_s21 = scalar_lea.hbm %s574_s0, 64 }
  0x16   :  { %p383_p8 = scmp.ne.s32.totalorder %s574_s0, %s382_s21  ;;  %p386_p9 = scmp.lt.u32.totalorder %s382_s21, %s574_s0 }
  0x18   :  { %p388_p10 = pnand %p386_p9, %p383_p8 }
  0x1a   :  { %391 = shalt.err (!%p388_p10)
}
  0x1b   :  { %s392_s1 = scalar_lea.vmem %s22_s16, 64  ;;  %p397_p12 = scmp.lt.s32.totalorder %s22_s16, %s22_s16 }
  0x1c   :  { %p393_p11 = scmp.ne.s32.totalorder %s22_s16, %s392_s1  ;;  %p398_p13 = scmp.lt.s32.totalorder %s392_s1, %s392_s1 }
  0x1e   :  { %p399_p0 = por %p398_p13, %p397_p12 }
  0x20   :  { %p400_p1 = pnand %p399_p0, %p393_p11 }
  0x22   :  { %403 = shalt.err (!%p400_p1)
}
  0x23   :  { %24 = dma.hbm_to_vmem [thread:$0]  %s574_s0, 64, %s22_s16, [#allocation3]  }
  0x24   :  { %s404_s30 = scalar_lea.hbm %s577_s3, 256 }
  0x25   :  { %p405_p2 = scmp.ne.s32.totalorder %s577_s3, %s404_s30  ;;  %p408_p3 = scmp.lt.u32.totalorder %s404_s30, %s577_s3 }
  0x27   :  { %p410_p4 = pnand %p408_p3, %p405_p2 }
  0x29   :  { %413 = shalt.err (!%p410_p4)
}
  0x2a   :  { %s414_s14 = scalar_lea.vmem %s45_s18, 256  ;;  %p419_p6 = scmp.lt.s32.totalorder %s45_s18, %s45_s18 }
  0x2b   :  { %p415_p5 = scmp.ne.s32.totalorder %s45_s18, %s414_s14  ;;  %p420_p7 = scmp.lt.s32.totalorder %s414_s14, %s414_s14 }
  0x2d   :  { %p421_p8 = por %p420_p7, %p419_p6 }
  0x2f   :  { %p422_p9 = pnand %p421_p8, %p415_p5 }
  0x31   :  { %425 = shalt.err (!%p422_p9)
}
  0x32   :  { %50 = dma.hbm_to_vmem [thread:$0]  %s577_s3, 256, %s45_s18, [#allocation6], %s455_s11, %s455_s11, %s456_s12  }
  0x33   :  { %448 = dma.done.wait [#allocation3], 64  }
  0x34   :  { %449 = vsyncadd [#allocation3], 4294967232 }
  0x35   :  { %450 = dma.done.wait [#allocation6], 512  }
  0x36   :  { %451 = vsyncadd [#allocation6], 4294966784  ;;  %v459_v0 = vmov 0.0   ;;  %vm460_vm0 = vmmov 0   ;;  %v350_v1 = vld [vmem:[#allocation5] sm:$0xff]   ;;  %v351_v2 = vld [vmem:[#allocation5 + $0x8] sm:$0xff]  }
  0x37   :  { %318 = vmatprep.subr.bf16.mxu0 %v459_v0  ;;  %322 = vmatprep.mubr.msk.bf16.mxu0 %vm460_vm0, %v459_v0  ;;  %v67_v3 = vld [vmem:[#allocation2] sm:$0xf]  ;;  %vm91_vm1 = vcmask 261120   ;;  %v352_v4 = vld [vmem:[#allocation7] sm:$0xff]   ;;  %v297_v7 = vld [vmem:[%s576_s2] ss:$0 sm:$0xff] }
  0x38   :  { %326 = vmatprep.subr.bf16.mxu1 %v459_v0  ;;  %330 = vmatprep.mubr.msk.bf16.mxu1 %vm460_vm0, %v459_v0  ;;  %v353_v5 = vld [vmem:[#allocation7 + $0x8] sm:$0xff]   ;;  %v354_v6 = vld [vmem:[%s579_s5] sm:$0xff]  }
  0x39   :  { %319 = vmatpush3.bf16.msra.mxu0 %v350_v1  ;;  %327 = vmatpush3.bf16.msra.mxu1 %v352_v4  ;;  %v355_v15 = vld [vmem:[%s579_s5 + $0x8] sm:$0xff]   ;;  %v301_v16 = vld [vmem:[%s578_s4] ss:$0 sm:$0xff]  ;;  %s461_s4 = smov [#allocation8]  }
  0x3a   :  { %320 = vmatprep.subr.bf16.mxu0 %v459_v0  ;;  %328 = vmatprep.subr.bf16.mxu1 %v459_v0  ;;  %v305_v24 = vld [vmem:[%s580_s6] ss:$0 sm:$0xff]  ;;  %s287_s5 = sshll.u32 %s461_s4, 4  ;;  %s288_s5 = int_to_ptr.vmem [resolvable:$true] %s287_s5 }
  0x3b   :  { %s426_s6 = scalar_lea.vmem %s288_s5, 128  ;;  %p431_p11 = scmp.lt.s32.totalorder %s288_s5, %s288_s5 }
  0x3c   :  { %p427_p10 = scmp.ne.s32.totalorder %s288_s5, %s426_s6  ;;  %p432_p12 = scmp.lt.s32.totalorder %s426_s6, %s426_s6 }
  0x3d   :  { %321 = vmatpush3.bf16.msra.mxu0 %v351_v2  ;;  %329 = vmatpush3.bf16.msra.mxu1 %v353_v5 }
  0x3e   :  { %334 = vmatprep.subr.bf16.mxu0 %v459_v0  ;;  %p433_p13 = por %p432_p12, %p431_p11 }
  0x40   :  { %323 = vmatmul.mubr.msk.bf16.vlgmr.msra.gmra.mrb[0].mxu0 %vm91_vm1, %v67_v3  ;;  %p434_p0 = pnand %p433_p13, %p427_p10 }
  0x41   :  { %338 = vmatprep.mubr.msk.bf16.mxu0 %vm460_vm0, %v459_v0  ;;  %335 = vmatpush3.bf16.msra.mxu0 %v354_v6 }
  0x42   :  { %336 = vmatprep.subr.bf16.mxu0 %v459_v0 }
  0x45   :  { %337 = vmatpush3.bf16.msra.mxu0 %v355_v15 }
 0x113   :  { %v129_v8 = vpop.f32.mrb[0].mxu0 }
 0x114   :  { %v130_v9 = vadd.f32 %v297_v7, %v129_v8  ;;  %v324_v10 = vpop.f32.mrb[1].mxu0 }
 0x115   :  { %v132_v11 = vpop.f32.mrb[2].mxu0 }
 0x116   :  { %v135_v12 = vmax.f32 %v130_v9, 0.0  ;;  %v325_v13 = vpop.f32.mrb[3].mxu0 }
 0x118   :  { %v136_v14 = vpack.c.bf16 %v135_v12, %v135_v12 }
 0x11a   :  { %331 = vmatmul.mubr.msk.bf16.vlgmr.msra.gmra.mrb[0].mxu1 %vm91_vm1, %v136_v14 }
 0x1ed   :  { %v197_v17 = vpop.f32.mrb[0].mxu1 }
 0x1ee   :  { %v198_v18 = vadd.f32 %v301_v16, %v197_v17  ;;  %v332_v19 = vpop.f32.mrb[1].mxu1 }
 0x1ef   :  { %v200_v20 = vpop.f32.mrb[2].mxu1 }
 0x1f0   :  { %v203_v21 = vmax.f32 %v198_v18, 0.0  ;;  %v333_v22 = vpop.f32.mrb[3].mxu1 }
 0x1f2   :  { %v204_v23 = vpack.c.bf16 %v203_v21, %v203_v21 }
 0x1f4   :  { %339 = vmatmul.mubr.msk.bf16.vlgmr.msra.gmra.mrb[4].mxu0 %vm91_vm1, %v204_v23 }
 0x2c7   :  { %v265_v25 = vpop.f32.mrb[4].mxu0 }
 0x2c8   :  { %v266_v26 = vadd.f32 %v305_v24, %v265_v25  ;;  %v340_v27 = vpop.f32.mrb[5].mxu0 }
 0x2c9   :  { %v268_v28 = vpop.f32.mrb[6].mxu0 }
 0x2ca   :  { %271 = vmax.xlane.f32.xlu0 %v266_v26  ;;  %v341_v29 = vpop.f32.mrb[7].mxu0 }
 0x357   :  { %v272_v30 = vpop.xlane.xlu0 %271 }
 0x358   :  { %v273_v31 = vsub.f32 %v266_v26, %v272_v30 }
 0x35a   :  { %v274_v32 = vmul.f32 1.442695, %v273_v31 }
 0x35c   :  { %356 = vpow2.f32 %v274_v32 }
 0x366   :  { %v357_v33 = vpop.eup %356 }
 0x367   :  { %276 = vadd.xlane.f32.xlu0 %v357_v33 }
 0x3f4   :  { %v277_v34 = vpop.xlane.xlu0 %276 }
 0x3f5   :  { %358 = vrcp.f32 %v277_v34 }
 0x3ff   :  { %v359_v35 = vpop.eup %358 }
 0x400   :  { %v279_v36 = vmul.f32 %v359_v35, %v357_v33 }
 0x402   :  { %280 = vst [vmem:[#allocation8] sm:$0xff] %v279_v36 }
 0x403   :  { %437 = shalt.err (!%p434_p0)
}
 0x404   :  { %s438_s24 = scalar_lea.hbm %s581_s7, 128 }
 0x405   :  { %p439_p1 = scmp.ne.s32.totalorder %s581_s7, %s438_s24  ;;  %p442_p2 = scmp.lt.u32.totalorder %s438_s24, %s581_s7 }
 0x407   :  { %p444_p3 = pnand %p442_p2, %p439_p1 }
 0x409   :  { %447 = shalt.err (!%p444_p3)
}
 0x40a   :  { %290 = dma.vmem_to_hbm [thread:$0]  %s288_s5, 128, %s581_s7, [#allocation4]  }
 0x40b   :  { %452 = dma.done.wait [#allocation4], 128  }
 0x40c   :  { %453 = vsyncadd [#allocation4], 4294967168 }
 0x40d   :  { %294 = vsyncpa [#allocation3], 1 }
 0x40e   :  { %295 = vsyncpa [#allocation6], 1 }
 0x40f   :  { %296 = vsyncpa [#allocation4], 1 }

</bundles_post_ra>
